<compile_context>
chip_gen: v7x
topology: tpu7x:2x2x1
jax: 0.10.0
libtpu: 0.0.40
codegen_flags: <defaults>
</compile_context>

<pallas_src>
import functools

import jax
import jax.numpy as jnp
from jax import lax
from jax.experimental import pallas as pl
from jax.experimental.pallas import tpu as pltpu


def _round_up(n, m):
    return ((n + m - 1) // m) * m


def dueling_q_kernel(xT_ref, w1_ref, wh_ref, out_ref, *, S, F1, A, B, TB):
    """Grid = (num_batch_tiles,). i = batch-tile index (lanes [i*TB, (i+1)*TB))."""
    i = pl.program_id(0)

    # Unpack the two VMEM-resident parameter slabs (static slices, no copies).
    w1t = w1_ref[:, 0:S]          # (F1, S)    fc1 weight, transposed
    b1t = w1_ref[:, S:S + 1]      # (F1, 1)    fc1 bias (column)
    wht = wh_ref[:, 0:F1]         # (1+A, F1)  fused [value | adv] weight, transposed
    bht = wh_ref[:, F1:F1 + 1]    # (1+A, 1)   fused [value | adv] bias (column)

    # fc1 (+ identity dropout) + relu, batch on the 128-lane axis.
    h = jnp.dot(w1t, xT_ref[...], preferred_element_type=jnp.float32)
    h = jnp.maximum(h + b1t, 0.0)                                   # (F1, TB) f32

    # Fused value/advantage heads: one MXU pass for both.
    heads = jnp.dot(wht, h.astype(wht.dtype),
                    preferred_element_type=jnp.float32) + bht       # (1+A, TB) f32
    v = heads[0:1, :]             # (1, TB)
    a = heads[1:1 + A, :]         # (A, TB)

    # Per-lane partial sum of `a`, masking batch-padding lanes so the global
    # mean in the wrapper matches torch.mean(a) over the real batch.
    col = i * TB + lax.broadcasted_iota(jnp.int32, (1, TB), 1)
    a_colsum = jnp.sum(jnp.where(col < B, a, 0.0), axis=0, keepdims=True)  # (1, TB)

    # Rows 0..A-1: un-normalized q = v + a ; row A: partial sum of a.
    out_ref[...] = jnp.concatenate([v + a, a_colsum], axis=0)


def dueling_q_forward(x, params, *, tile_b=2048, compute_dtype=jnp.bfloat16):
    """x: (B, state_size) f32.  params: (in, out)-layout weights, (1, out) biases."""
    B, S = x.shape
    F1 = params["w1"].shape[1]
    A = params["wa"].shape[1]

    # Pack parameters transposed so batch stays on the lane axis in-kernel:
    #   slab1 = [W1^T | b1^T]               : (F1, S+1)
    #   slab2 = [[Wv|Wa]^T | [bv|ba]^T]     : (1+A, F1+1)
    slab1 = jnp.concatenate([params["w1"].T, params["b1"].T], axis=1)
    w_heads = jnp.concatenate([params["wv"], params["wa"]], axis=1)     # (F1, 1+A)
    b_heads = jnp.concatenate([params["bv"], params["ba"]], axis=1)     # (1, 1+A)
    slab2 = jnp.concatenate([w_heads.T, b_heads.T], axis=1)             # (1+A, F1+1)

    # Batch tile on the lane axis: multiple of 128 (v5e MXU / lane width) and of
    # 256 at the default (v6e/v7x MXU).  Pad batch to a whole number of tiles.
    TB = _round_up(max(128, min(tile_b, _round_up(B, 128))), 128)
    B_pad = _round_up(B, TB)
    nt = B_pad // TB

    xT = jnp.pad(x.T, ((0, 0), (0, B_pad - B))).astype(compute_dtype)
    slab1 = slab1.astype(compute_dtype)
    slab2 = slab2.astype(compute_dtype)

    kernel = functools.partial(dueling_q_kernel, S=S, F1=F1, A=A, B=B, TB=TB)

    out = pl.pallas_call(
        kernel,
        out_shape=jax.ShapeDtypeStruct((1 + A, B_pad), jnp.float32),
        grid=(nt,),
        in_specs=[
            pl.BlockSpec((S, TB), lambda i: (0, i)),            # x^T batch tile
            pl.BlockSpec((F1, S + 1), lambda i: (0, 0)),        # VMEM-resident
            pl.BlockSpec((1 + A, F1 + 1), lambda i: (0, 0)),    # VMEM-resident
        ],
        out_specs=pl.BlockSpec((1 + A, TB), lambda i: (0, i)),
        compiler_params=pltpu.CompilerParams(
            # Per-tile partial sums -> batch axis is safe to shard across
            # TensorCores (v7x megacore); no-op on v5e/v6e.
            dimension_semantics=("parallel",)),
    )(xT, slab1, slab2)

    # Trivial XLA epilogue: finish the global torch.mean(a) and form q.
    a_avg = jnp.sum(out[A, :]) / (B * A)          # padded lanes are zeroed in-kernel
    return (out[:A, :B] - a_avg).T                # (B, A)


def init_params(key, state_size, action_size, fc1_size=64, fc2_size=64):
    """Deterministic init mimicking nn.Linear's U(-1/sqrt(fan_in), 1/sqrt(fan_in))."""
    ks = jax.random.split(key, 6)

    def lin(kw, kb, fan_in, fan_out):
        bound = 1.0 / jnp.sqrt(jnp.float32(fan_in))
        w = jax.random.uniform(kw, (fan_in, fan_out), jnp.float32, -bound, bound)
        b = jax.random.uniform(kb, (1, fan_out), jnp.float32, -bound, bound)
        return w, b

    w1, b1 = lin(ks[0], ks[1], state_size, fc1_size)   # fc1
    # (fc_value / fc_adv weights exist in the module but are dead code in forward)
    wv, bv = lin(ks[2], ks[3], fc2_size, 1)            # value head
    wa, ba = lin(ks[4], ks[5], fc2_size, action_size)  # advantage head
    return {"w1": w1, "b1": b1, "wv": wv, "bv": bv, "wa": wa, "ba": ba}


def reference_forward(x, p):
    """Pure-JAX f32 reference of the (inference-mode) PyTorch forward."""
    h = jnp.maximum(x @ p["w1"] + p["b1"], 0.0)
    v = h @ p["wv"] + p["bv"]
    a = h @ p["wa"] + p["ba"]
    return v + a - jnp.mean(a)


if __name__ == "__main__":
    B, STATE, ACTION = 2, 8, 4
    key = jax.random.PRNGKey(0)
    k_x, k_p = jax.random.split(key)

    x = jax.random.normal(k_x, (B, STATE), jnp.float32)
    params = init_params(k_p, STATE, ACTION)
    q_ref = reference_forward(x, params)

    # Default path: bf16 MXU inputs, f32 accumulate/epilogue.
    q = jax.block_until_ready(dueling_q_forward(x, params))
    assert q.shape == (B, ACTION)
    assert jnp.allclose(q, q_ref, atol=1e-1, rtol=1e-1), (q, q_ref)

    # f32 compute path: tight match to the reference.
    q32 = jax.block_until_ready(
        dueling_q_forward(x, params, compute_dtype=jnp.float32))
    assert jnp.allclose(q32, q_ref, atol=1e-5, rtol=1e-5), (q32, q_ref)

    # Multi-tile batch grid: padding, per-tile partial sums, parallel axis.
    B2 = 300
    x2 = jax.random.normal(jax.random.PRNGKey(1), (B2, STATE), jnp.float32)
    q2_ref = reference_forward(x2, params)

    q2 = jax.block_until_ready(dueling_q_forward(x2, params, tile_b=128))
    assert q2.shape == (B2, ACTION)
    assert jnp.allclose(q2, q2_ref, atol=1e-1, rtol=1e-1), float(
        jnp.max(jnp.abs(q2 - q2_ref)))

    q2_32 = jax.block_until_ready(
        dueling_q_forward(x2, params, tile_b=128, compute_dtype=jnp.float32))
    assert jnp.allclose(q2_32, q2_ref, atol=1e-4, rtol=1e-4), float(
        jnp.max(jnp.abs(q2_32 - q2_ref)))

    print("KERNEL_OK")
</pallas_src>

<mosaic_0001>
module attributes {stable_mosaic.version = 11 : i64} {
  func.func @dueling_q_kernel(%arg0: i32, %arg1: memref<8x128xbf16, #tpu.memory_space<vmem>>, %arg2: memref<64x9xbf16, #tpu.memory_space<vmem>>, %arg3: memref<5x65xbf16, #tpu.memory_space<vmem>>, %arg4: memref<5x128xf32, #tpu.memory_space<vmem>>) attributes {dimension_semantics = [#tpu.dimension_semantics<parallel>], iteration_bounds = array<i64: 1>, scalar_prefetch = 0 : i64, scratch_operands = 0 : i64, tpu.core_type = #tpu.core_type<tc>, window_params = [{transform_indices = @transform_0, window_bounds = array<i64: 8, 128>}, {pipeline_mode = #tpu.pipeline_mode<synchronous>, transform_indices = @transform_1, window_bounds = array<i64: 64, 9>}, {pipeline_mode = #tpu.pipeline_mode<synchronous>, transform_indices = @transform_2, window_bounds = array<i64: 5, 65>}, {transform_indices = @transform_3, window_bounds = array<i64: 5, 128>}]} {
    %c0 = arith.constant 0 : index
    %c0_0 = arith.constant 0 : index
    %0 = vector.load %arg2[%c0, %c0_0] : memref<64x9xbf16, #tpu.memory_space<vmem>>, vector<64x8xbf16>
    %c0_1 = arith.constant 0 : index
    %c8 = arith.constant 8 : index
    %1 = vector.load %arg2[%c0_1, %c8] : memref<64x9xbf16, #tpu.memory_space<vmem>>, vector<64x1xbf16>
    %c0_2 = arith.constant 0 : index
    %c0_3 = arith.constant 0 : index
    %2 = vector.load %arg3[%c0_2, %c0_3] : memref<5x65xbf16, #tpu.memory_space<vmem>>, vector<5x64xbf16>
    %c0_4 = arith.constant 0 : index
    %c64 = arith.constant 64 : index
    %3 = vector.load %arg3[%c0_4, %c64] : memref<5x65xbf16, #tpu.memory_space<vmem>>, vector<5x1xbf16>
    %c0_5 = arith.constant 0 : index
    %c0_6 = arith.constant 0 : index
    %4 = vector.load %arg1[%c0_5, %c0_6] : memref<8x128xbf16, #tpu.memory_space<vmem>>, vector<8x128xbf16>
    %cst = arith.constant dense<0.000000e+00> : vector<64x128xf32>
    %5 = tpu.matmul %0, %4, %cst {dimension_numbers = #tpu.dot_dimension_numbers<[1], [0], [0], [1], [0, 0, 1, 1], [], []>} : vector<64x8xbf16>, vector<8x128xbf16>, vector<64x128xf32> -> vector<64x128xf32>
    %6 = arith.extf %1 : vector<64x1xbf16> to vector<64x1xf32>
    %7 = vector.broadcast %6 : vector<64x1xf32> to vector<64x128xf32>
    %8 = arith.addf %5, %7 : vector<64x128xf32>
    %cst_7 = arith.constant 0.000000e+00 : f32
    %9 = vector.broadcast %cst_7 : f32 to vector<64x128xf32>
    %10 = arith.maximumf %8, %9 : vector<64x128xf32>
    %11 = arith.truncf %10 : vector<64x128xf32> to vector<64x128xbf16>
    %cst_8 = arith.constant dense<0.000000e+00> : vector<5x128xf32>
    %12 = tpu.matmul %2, %11, %cst_8 {dimension_numbers = #tpu.dot_dimension_numbers<[1], [0], [0], [1], [0, 0, 1, 1], [], []>} : vector<5x64xbf16>, vector<64x128xbf16>, vector<5x128xf32> -> vector<5x128xf32>
    %13 = arith.extf %3 : vector<5x1xbf16> to vector<5x1xf32>
    %14 = vector.broadcast %13 : vector<5x1xf32> to vector<5x128xf32>
    %15 = arith.addf %12, %14 : vector<5x128xf32>
    %16 = vector.extract_strided_slice %15 {offsets = [0, 0], sizes = [1, 128], strides = [1, 1]} : vector<5x128xf32> to vector<1x128xf32>
    %17 = vector.extract_strided_slice %15 {offsets = [1, 0], sizes = [4, 128], strides = [1, 1]} : vector<5x128xf32> to vector<4x128xf32>
    %c128_i32 = arith.constant 128 : i32
    %18 = arith.muli %arg0, %c128_i32 : i32
    %19 = tpu.iota {dimensions = array<i32: 1>} : vector<1x128xi32>
    %20 = vector.broadcast %18 : i32 to vector<1x128xi32>
    %21 = arith.addi %20, %19 : vector<1x128xi32>
    %c2_i32 = arith.constant 2 : i32
    %22 = vector.broadcast %c2_i32 : i32 to vector<1x128xi32>
    %23 = arith.cmpi slt, %21, %22 : vector<1x128xi32>
    %cst_9 = arith.constant 0.000000e+00 : f32
    %24 = vector.shape_cast %23 : vector<1x128xi1> to vector<1x128xi1>
    %25 = vector.broadcast %24 : vector<1x128xi1> to vector<4x128xi1>
    %26 = vector.broadcast %cst_9 : f32 to vector<4x128xf32>
    %27 = arith.select %25, %17, %26 : vector<4x128xi1>, vector<4x128xf32>
    %cst_10 = arith.constant dense<0.000000e+00> : vector<128xf32>
    %28 = vector.multi_reduction <add>, %27, %cst_10 [0] : vector<4x128xf32> to vector<128xf32>
    %29 = vector.shape_cast %28 : vector<128xf32> to vector<1x128xf32>
    %30 = vector.broadcast %16 : vector<1x128xf32> to vector<4x128xf32>
    %31 = arith.addf %30, %17 : vector<4x128xf32>
    %32 = tpu.concatenate %31, %29 in 0 : vector<4x128xf32>, vector<1x128xf32> -> vector<5x128xf32>
    %c0_11 = arith.constant 0 : index
    %c0_12 = arith.constant 0 : index
    %33 = vector.load %arg4[%c0_11, %c0_12] : memref<5x128xf32, #tpu.memory_space<vmem>>, vector<5x128xf32>
    tpu.vector_store %arg4[%c0_11, %c0_12], %32 {strides = array<i32>} : memref<5x128xf32, #tpu.memory_space<vmem>>, vector<5x128xf32>,
    return
  }
  func.func @transform_0(%arg0: i32) -> (i32, i32) {
    %c0_i32 = arith.constant 0 : i32
    %c0_i32_0 = arith.constant 0 : i32
    return %c0_i32, %arg0 : i32, i32
  }
  func.func @transform_1(%arg0: i32) -> (i32, i32) {
    %c0_i32 = arith.constant 0 : i32
    %c0_i32_0 = arith.constant 0 : i32
    %c0_i32_1 = arith.constant 0 : i32
    return %c0_i32, %c0_i32_0 : i32, i32
  }
  func.func @transform_2(%arg0: i32) -> (i32, i32) {
    %c0_i32 = arith.constant 0 : i32
    %c0_i32_0 = arith.constant 0 : i32
    %c0_i32_1 = arith.constant 0 : i32
    return %c0_i32, %c0_i32_0 : i32, i32
  }
  func.func @transform_3(%arg0: i32) -> (i32, i32) {
    %c0_i32 = arith.constant 0 : i32
    %c0_i32_0 = arith.constant 0 : i32
    return %c0_i32, %arg0 : i32, i32
  }
}

</mosaic_0001>

<bundles_post_ra>
// kernel: tpu_custom_call.1
= control target key start
LH: loop header
LB: loop body
LE: loop exit
PB: predicated region body
PF: predicated region fallthrough
CT: control target
= control target key end

     0   :  { %vm107_vm0 = vcmask 1043456   ;;  %vm94_vm1 = vcmask 64512   ;;  %s454_s0 = inlined_call_operand.vmem [shape: bf16[8,128], index: 0, kind: input, shape index: {}]   ;;  %s455_s1 = inlined_call_operand.vmem [shape: bf16[64,9], index: 1, kind: input, shape index: {}]   ;;  %s456_s2 = inlined_call_operand.vmem [shape: bf16[5,65], index: 2, kind: input, shape index: {}]   ;;  %s457_s3 = inlined_call_operand.hbm [shape: f32[5,128], index: 3, kind: output, shape index: {}]  }
   0x1   :  { %v25_v0 = vld [vmem:[%s454_s0] sm:$0xf]  ;;  %v18_v2 = vld [vmem:[%s455_s1 + $0x8] sm:$0xff]   ;;  %v20_v4 = vld [vmem:[%s455_s1 + $0x10] sm:$0xff]  }
   0x2   :  { %v16_v1 = vld [vmem:[%s455_s1] sm:$0xff]   ;;  %322 = vmatprep.subr.msk.bf16.mxu0 %vm107_vm0, %v25_v0  ;;  %v109_v3 = vsel %vm107_vm0, %v25_v0, 0 }
   0x3   :  { %8 = vsyncpa [#allocation3], 0  ;;  %301 = vmatpush3.bf16.msra.mxu0 %v109_v3  ;;  %v391_v5 = vmov 8   ;;  %v26_v6 = vunpack.c.l.bf16 %v16_v1  ;;  %v27_v7 = vunpack.c.h.bf16 %v16_v1  ;;  %302 = vmatprep.mubr.msk.bf16.mxu0 %vm94_vm1, %v16_v1  ;;  %v22_v8 = vld [vmem:[%s455_s1 + $0x18] sm:$0xff]   ;;  %v28_v9 = vunpack.c.l.bf16 %v18_v2  ;;  %v24_v20 = vld [vmem:[%s456_s2] sm:$0x7] }
   0x4   :  { %328 = vset.pattern.permute.xlu0 %v391_v5  ;;  %v29_v10 = vunpack.c.h.bf16 %v18_v2  ;;  %339 = vset.pattern.permute.xlu1 %v391_v5  ;;  %v30_v11 = vunpack.c.l.bf16 %v20_v4  ;;  %v31_v12 = vunpack.c.h.bf16 %v20_v4  ;;  %v32_v14 = vunpack.c.l.bf16 %v22_v8  ;;  %s395_s2 = smov [#allocation2]  }
   0x5   :  { %v329_v13 = vpack.i.bf16 %v27_v7, %v26_v6  ;;  %v33_v15 = vunpack.c.h.bf16 %v22_v8  ;;  %v392_v19 = vmov 0.0   ;;  %vm393_vm2 = vmmov 0   ;;  %s273_s22 = sshll.u32 %s395_s2, 4  ;;  %s274_s22 = int_to_ptr.vmem [resolvable:$true] %s273_s22 }
   0x6   :  { %303 = vmatmul.mubr.msk.bf16.vlgmr.msra.gmra.mrb[0].mxu0 %vm94_vm1, %v18_v2  ;;  %v340_v16 = vpack.i.bf16 %v31_v12, %v30_v11  ;;  %v334_v17 = vpack.i.bf16 %v29_v10, %v28_v9  ;;  %310 = vmatprep.subr.bf16.mxu1 %v392_v19  ;;  %v188_v21 = vunpack.c.l.bf16 %v24_v20  ;;  %v394_v22 = vmov 64   ;;  %s367_s23 = scalar_lea.vmem %s274_s22, 128  ;;  %p372_p1 = scmp.lt.s32.totalorder %s274_s22, %s274_s22 }
   0x7   :  { %306 = vmatprep.mubr.msk.bf16.mxu0 %vm94_vm1, %v20_v4  ;;  %330 = vperm.xlu0 %328, %v329_v13   ;;  %v345_v18 = vpack.i.bf16 %v33_v15, %v32_v14  ;;  %vm194_vm3 = vcmask 523264   ;;  %v239_v55 = vlaneseq  ;;  %p368_p0 = scmp.ne.s32.totalorder %s274_s22, %s367_s23  ;;  %p373_p2 = scmp.lt.s32.totalorder %s367_s23, %s367_s23 }
   0x8   :  { %341 = vperm.xlu1 %339, %v340_v16   ;;  %318 = vmatprep.mubr.msk.bf16.mxu1 %vm393_vm2, %v392_v19 }
   0x9   :  { %v240_v56 = vand.u32 127, %v239_v55  ;;  %v258_v60 = vshrl.u32 %v239_v55, 7  ;;  %p374_p3 = por %p373_p2, %p372_p1 }
   0xb   :  { %335 = vperm.xlu0 %328, %v334_v17   ;;  %vm243_vm4 = vcmp.lt.s32.totalorder %v240_v56, 2  ;;  %v259_v2 = vsub.s32 0, %v258_v60  ;;  %p375_p4 = pnand %p374_p3, %p368_p0 }
   0xc   :  { %346 = vperm.xlu1 %339, %v345_v18  }
   0xe   :  { %307 = vmatmul.mubr.msk.bf16.gmra.mrb[4].mxu0 %vm94_vm1, %v22_v8 }
   0xf   :  { %350 = vset.pattern.permute.xlu0 %v394_v22 }
  0x10   :  { %191 = vperm.xlu0 %350, %v188_v21  }
  0x86   :  { %v331_v23 = vpop.permute.xlu0 %330 }
  0x87   :  { %v342_v25 = vpop.permute.xlu1 %341 }
  0x8a   :  { %v336_v24 = vpop.permute.xlu0 %335 }
  0x8b   :  { %v347_v31 = vpop.permute.xlu1 %346 }
  0x8f   :  { %v192_v57 = vpop.permute.xlu0 %191 }
  0xd9   :  { %v304_v26 = vpop.f32.mrb[0].mxu0 }
  0xda   :  { %v359_v27 = vadd.low.f32.bf16 %v304_v26, %v336_v24  ;;  %v145_v28 = vpop.f32.mrb[1].mxu0 }
  0xdb   :  { %v360_v29 = vadd.low.f32.bf16 %v145_v28, %v331_v23  ;;  %v305_v30 = vpop.f32.mrb[2].mxu0 }
  0xdc   :  { %v361_v32 = vadd.high.f32.bf16 %v305_v30, %v336_v24  ;;  %v148_v33 = vpop.f32.mrb[3].mxu0  ;;  %v178_v35 = vmax.f32 %v359_v27, 0.0 }
  0xdd   :  { %v362_v34 = vadd.high.f32.bf16 %v148_v33, %v331_v23  ;;  %v176_v37 = vmax.f32 %v360_v29, 0.0 }
  0xde   :  { %v179_v36 = vmax.f32 %v361_v32, 0.0 }
  0xdf   :  { %v177_v38 = vmax.f32 %v362_v34, 0.0 }
  0xe0   :  { %v185_v39 = vpack.c.bf16 %v179_v36, %v178_v35 }
  0xe1   :  { %v308_v40 = vpop.f32.mrb[4].mxu0  ;;  %v184_v41 = vpack.c.bf16 %v177_v38, %v176_v37 }
  0xe2   :  { %v363_v42 = vadd.low.f32.bf16 %v308_v40, %v347_v31  ;;  %v161_v43 = vpop.f32.mrb[5].mxu0 }
  0xe3   :  { %v364_v44 = vadd.low.f32.bf16 %v161_v43, %v342_v25  ;;  %v309_v45 = vpop.f32.mrb[6].mxu0  ;;  %311 = vmatpush3.bf16.msra.mxu1 %v184_v41 }
  0xe4   :  { %v365_v46 = vadd.high.f32.bf16 %v309_v45, %v347_v31  ;;  %v164_v47 = vpop.f32.mrb[7].mxu0  ;;  %312 = vmatprep.subr.bf16.mxu1 %v392_v19  ;;  %v182_v49 = vmax.f32 %v363_v42, 0.0 }
  0xe5   :  { %v366_v48 = vadd.high.f32.bf16 %v164_v47, %v342_v25  ;;  %v180_v51 = vmax.f32 %v364_v44, 0.0 }
  0xe6   :  { %v183_v50 = vmax.f32 %v365_v46, 0.0 }
  0xe7   :  { %v181_v52 = vmax.f32 %v366_v48, 0.0  ;;  %313 = vmatpush3.bf16.msra.mxu1 %v185_v39 }
  0xe8   :  { %v187_v53 = vpack.c.bf16 %v183_v50, %v182_v49  ;;  %314 = vmatprep.subr.bf16.mxu1 %v392_v19 }
  0xe9   :  { %v186_v54 = vpack.c.bf16 %v181_v52, %v180_v51 }
  0xeb   :  { %315 = vmatpush3.bf16.msra.mxu1 %v186_v54 }
  0xec   :  { %316 = vmatprep.subr.bf16.mxu1 %v392_v19 }
  0xef   :  { %317 = vmatpush3.bf16.msra.mxu1 %v187_v53 }
  0xf2   :  { %319 = vmatmul.mubr.msk.bf16.vlgmr.msra.gmra.mrb[0].mxu1 %vm194_vm3, %v24_v20 }
 0x1c5   :  { %v232_v58 = vpop.f32.mrb[0].mxu1 }
 0x1c6   :  { %v233_v59 = vadd.f32 %v232_v58, %v192_v57  ;;  %v320_v61 = vpop.f32.mrb[1].mxu1 }
 0x1c7   :  { %v235_v62 = vpop.f32.mrb[2].mxu1 }
 0x1c8   :  { %v246_v63 = vsel %vm243_vm4, %v233_v59, 0.0  ;;  %v321_v0 = vpop.f32.mrb[3].mxu1  ;;  %v260_v6 = vrot.slane %v233_v59, %v259_v2 }
 0x1c9   :  { %v248_v1 = vrot.slane %v246_v63, 1 }
 0x1ca   :  { %v261_v8 = vadd.f32 %v260_v6, %v233_v59 }
 0x1cb   :  { %v250_v3 = vsel %vm107_vm0, %v248_v1, 0.0 }
 0x1cc   :  { %v251_v4 = vrot.slane %v250_v3, 4  ;;  %v263_v11 = vrot.slane %v261_v8, 1 }
 0x1ce   :  { %v252_v5 = vadd.f32 %v251_v4, %v250_v3 }
 0x1d0   :  { %v253_v7 = vrot.slane %v252_v5, 2 }
 0x1d2   :  { %v254_v9 = vadd.f32 %v253_v7, %v252_v5 }
 0x1d4   :  { %v255_v10 = vrot.slane %v254_v9, 1 }
 0x1d6   :  { %v256_v12 = vadd.f32 %v255_v10, %v254_v9 }
 0x1d8   :  { %v265_v13 = vsel %vm107_vm0, %v263_v11, %v256_v12 }
 0x1d9   :  { %266 = vst [vmem:[#allocation2] sm:$0x1f] %v265_v13 }
 0x1da   :  { %378 = shalt.err (!%p375_p4)
}
 0x1db   :  { %s379_s26 = scalar_lea.hbm %s457_s3, 128 }
 0x1dc   :  { %p380_p5 = scmp.ne.s32.totalorder %s457_s3, %s379_s26  ;;  %p383_p6 = scmp.lt.u32.totalorder %s379_s26, %s457_s3 }
 0x1de   :  { %p385_p7 = pnand %p383_p6, %p380_p5 }
 0x1e0   :  { %388 = shalt.err (!%p385_p7)
}
 0x1e1   :  { %276 = dma.vmem_to_hbm [thread:$0]  %s274_s22, 128, %s457_s3, [#allocation3]  }
 0x1e2   :  { %389 = dma.done.wait [#allocation3], 128  }
 0x1e3   :  { %390 = vsyncadd [#allocation3], 4294967168 }
 0x1e4   :  { %280 = vsyncpa [#allocation3], 1 }

</bundles_post_ra>
